<compile_context>
chip_gen: v6e
topology: v6e:2x2x1
jax: 0.10.0
libtpu: 0.0.40
codegen_flags: <defaults>
</compile_context>

<pallas_src>
import jax
import jax.numpy as jnp
from jax.experimental import pallas as pl
from jax.experimental.pallas import tpu as pltpu


def optfs_kernel(x_ref, g_ref, exp_ref, o_ref):
    # x_ref:   VMEM (TB, f*e)    input embeddings, lane-dense view
    # g_ref:   VMEM (TB, f_pad)  per-(sample, field) gate, break-masked, 0-padded
    # exp_ref: VMEM (f_pad, f*e) 0/1 one-hot expansion matrix (field -> its e lanes)
    # o_ref:   VMEM (TB, f*e)    output
    g = g_ref[...].astype(jnp.float32)
    # Expand (TB, f_pad) -> (TB, f*e) on the otherwise-idle MXU.  Operands of
    # the one-hot matrix are exactly 0/1; HIGHEST precision keeps the f32 gate
    # values exact vs. the reference.
    g_exp = jnp.dot(g, exp_ref[...],
                    preferred_element_type=jnp.float32,
                    precision=jax.lax.Precision.HIGHEST)
    o_ref[...] = (x_ref[...].astype(jnp.float32) * g_exp).astype(o_ref.dtype)


def optfs_forward(x, gate_concat, raw_concat, field_offsets, token_ids,
                  token_mask, current_epoch, epochs, *, block_b=None):
    """x: (b, f, e); gate_concat/raw_concat: (V,) concatenated per-field gate
    logits; field_offsets: (f,) i32 start of each token field's vocab in the
    concat; token_ids: (b, f) i32 = batch_data[field][i]; token_mask: (f,)
    1.0 for fields the PyTorch loop reaches before its `break`, else 0.0."""
    b, f, e = x.shape
    fe = f * e
    t = 200.0 * (float(current_epoch) / float(epochs))

    # ---- tiny XLA glue: one consolidated per-(sample, field) gate ----------
    idx = field_offsets[None, :] + token_ids                              # (b, f)
    gate = gate_concat[idx].astype(jnp.float32)
    raw = raw_concat[idx].astype(jnp.float32)
    g_bf = jax.nn.sigmoid(gate * t) / jax.nn.sigmoid(raw)                 # (b, f)
    # where, not multiply: inf * 0 -> NaN; the PyTorch break leaves exact 0s.
    g_bf = jnp.where(token_mask[None, :] > 0, g_bf, 0.0)

    # Pad the field axis to a sublane multiple (>= 8); padded gate columns are
    # zero and the matching expansion rows are zero, so they contribute nothing.
    f_pad = max(8, ((f + 7) // 8) * 8)
    g_pad = jnp.zeros((b, f_pad), jnp.float32).at[:, :f].set(g_bf)

    # (f_pad, f*e) 0/1 one-hot expansion matrix: row j is 1 on field j's e lanes.
    expand = (jnp.arange(fe, dtype=jnp.int32)[None, :] // e
              == jnp.arange(f_pad, dtype=jnp.int32)[:, None]).astype(jnp.float32)

    # Lane-dense view; here fe = 4*32 = 128 so stores are unmasked vst.
    # TODO(synk): if fe % 128 != 0, re-view as (b*fe // L, L) with L a multiple
    # of 128 (and remap the gate) to keep the unmasked-store fast path.
    x2d = x.reshape(b, fe)

    # ---- batch tile sizing: double-buffered footprint target ~24 MiB -------
    itemsize = jnp.dtype(x.dtype).itemsize
    x_row = fe * itemsize
    o_row = fe * itemsize
    g_row = 128 * 4                      # gate tile row, lane-padded to 128 f32 lanes
    row_bytes = x_row + o_row + g_row
    if block_b is None:
        budget = 24 * 1024 * 1024        # 2 buffers x (x + out + gate) <= ~24 MiB
        block_b = budget // (2 * row_bytes)
        block_b = max(8, min(8192, block_b))
    block_b = min(block_b, b)
    if block_b > 8:
        block_b = (block_b // 8) * 8
    grid = (pl.cdiv(b, block_b),)

    # VMEM limit from actual need + slack, generation-aware where possible.
    need = 2 * block_b * row_bytes + 2 * f_pad * max(fe, 128) * 4
    try:
        phys = pltpu.get_tpu_info().vmem_capacity_bytes
    except Exception:
        phys = 64 * 1024 * 1024          # conservative: v7x per-TC VMEM
    vmem_limit = int(max(16 * 1024 * 1024,
                         min(need + 8 * 1024 * 1024, (phys * 3) // 4)))

    out2d = pl.pallas_call(
        optfs_kernel,
        out_shape=jax.ShapeDtypeStruct((b, fe), x.dtype),
        grid_spec=pltpu.PrefetchScalarGridSpec(
            num_scalar_prefetch=0,
            grid=grid,
            in_specs=[
                pl.BlockSpec((block_b, fe), lambda i: (i, 0)),      # x tile
                pl.BlockSpec((block_b, f_pad), lambda i: (i, 0)),   # gate tile (tiny)
                pl.BlockSpec((f_pad, fe), lambda i: (0, 0)),        # expansion matrix
            ],
            out_specs=pl.BlockSpec((block_b, fe), lambda i: (i, 0)),
        ),
        compiler_params=pltpu.CompilerParams(
            # TODO(synk): on v7x, confirm both TensorCores shard this axis in an
            # xprof trace; if one TC idles, switch to pltpu.CORE_PARALLEL and
            # halve the per-TC tile budget.
            dimension_semantics=("parallel",),
            vmem_limit_bytes=vmem_limit,
        ),
    )(x2d, g_pad, expand)
    return out2d.reshape(b, f, e)


if __name__ == "__main__":
    key = jax.random.PRNGKey(0)
    b, e = 64, 32
    fields = ["user_id", "item_id", "cat_id", "price"]
    field2type = {"user_id": "token", "item_id": "token",
                  "cat_id": "token", "price": "float"}
    vocab = {"user_id": 10, "item_id": 13, "cat_id": 7}
    epochs = 10
    current_epoch = 3

    # xavier_uniform init of each (vocab, 1) gate as in __init__; raw_gate is a
    # detached clone of the initial gate, so raw_gc == gc at init.
    gates = []
    for field in fields:
        if field2type[field] != "token":
            continue
        key, sub = jax.random.split(key)
        v = vocab[field]
        bound = (6.0 / (v + 1)) ** 0.5           # fan_in=1, fan_out=v for (v, 1)
        gates.append(jax.random.uniform(sub, (v,), jnp.float32, -bound, bound))
    gate_concat = jnp.concatenate(gates)
    raw_concat = gate_concat                     # clone of the initial gate values

    # Offsets of each field's vocab inside the concatenated gate vector; the
    # mask mirrors the PyTorch `break` at the first non-'token' field.
    offsets, off, token_mask, broke = [], 0, [], False
    for field in fields:
        if field2type[field] == "token":
            offsets.append(off)
            off += vocab[field]
        else:
            offsets.append(0)
            broke = True
        token_mask.append(0.0 if (broke or field2type[field] != "token") else 1.0)
    field_offsets = jnp.array(offsets, jnp.int32)
    mask = jnp.array(token_mask, jnp.float32)

    key, sub = jax.random.split(key)
    x = jax.random.normal(sub, (b, len(fields), e), jnp.float32)

    ids_cols = []
    for field in fields:
        key, sub = jax.random.split(key)
        if field2type[field] == "token":
            ids_cols.append(jax.random.randint(sub, (b,), 0, vocab[field]))
        else:
            ids_cols.append(jnp.zeros((b,), jnp.int32))   # masked, index unused
    token_ids = jnp.stack(ids_cols, axis=1).astype(jnp.int32)

    out = optfs_forward(x, gate_concat, raw_concat, field_offsets, token_ids,
                        mask, current_epoch, epochs, block_b=16)  # grid of 4 steps
    out = jax.block_until_ready(out)

    # Pure-JAX reference mirroring the PyTorch forward (train mode + break).
    t = 200.0 * (current_epoch / epochs)
    idx = field_offsets[None, :] + token_ids
    g_ref = jax.nn.sigmoid(gate_concat[idx] * t) / jax.nn.sigmoid(raw_concat[idx])
    g_ref = jnp.where(mask[None, :] > 0, g_ref, 0.0)
    ref = x * g_ref[:, :, None]
    assert out.shape == x.shape and out.dtype == x.dtype
    assert jnp.allclose(out, ref, atol=1e-5, rtol=1e-5)
    print("KERNEL_OK")
</pallas_src>

<mosaic_0001>
module attributes {stable_mosaic.version = 11 : i64} {
  func.func @optfs_kernel(%arg0: i32, %arg1: memref<16x128xf32, #tpu.memory_space<vmem>>, %arg2: memref<16x8xf32, #tpu.memory_space<vmem>>, %arg3: memref<8x128xf32, #tpu.memory_space<vmem>>, %arg4: memref<16x128xf32, #tpu.memory_space<vmem>>) attributes {dimension_semantics = [#tpu.dimension_semantics<parallel>], iteration_bounds = array<i64: 4>, scalar_prefetch = 0 : i64, scratch_operands = 0 : i64, tpu.core_type = #tpu.core_type<tc>, window_params = [{transform_indices = @transform_0, window_bounds = array<i64: 16, 128>}, {transform_indices = @transform_1, window_bounds = array<i64: 16, 8>}, {pipeline_mode = #tpu.pipeline_mode<synchronous>, transform_indices = @transform_2, window_bounds = array<i64: 8, 128>}, {transform_indices = @transform_3, window_bounds = array<i64: 16, 128>}]} {
    %c0 = arith.constant 0 : index
    %c0_0 = arith.constant 0 : index
    %0 = vector.load %arg2[%c0, %c0_0] : memref<16x8xf32, #tpu.memory_space<vmem>>, vector<16x8xf32>
    %c0_1 = arith.constant 0 : index
    %c0_2 = arith.constant 0 : index
    %1 = vector.load %arg3[%c0_1, %c0_2] : memref<8x128xf32, #tpu.memory_space<vmem>>, vector<8x128xf32>
    %cst = arith.constant dense<0.000000e+00> : vector<16x128xf32>
    %2 = tpu.matmul %0, %1, %cst {dimension_numbers = #tpu.dot_dimension_numbers<[1], [0], [0], [1], [0, 0, 1, 1], [], []>, precision = #tpu.contract_precision<fp32>} : vector<16x8xf32>, vector<8x128xf32>, vector<16x128xf32> -> vector<16x128xf32>
    %c0_3 = arith.constant 0 : index
    %c0_4 = arith.constant 0 : index
    %3 = vector.load %arg1[%c0_3, %c0_4] : memref<16x128xf32, #tpu.memory_space<vmem>>, vector<16x128xf32>
    %4 = arith.mulf %3, %2 : vector<16x128xf32>
    %c0_5 = arith.constant 0 : index
    %c0_6 = arith.constant 0 : index
    %5 = vector.load %arg4[%c0_5, %c0_6] : memref<16x128xf32, #tpu.memory_space<vmem>>, vector<16x128xf32>
    tpu.vector_store %arg4[%c0_5, %c0_6], %4 {strides = array<i32>} : memref<16x128xf32, #tpu.memory_space<vmem>>, vector<16x128xf32>,
    return
  }
  func.func @transform_0(%arg0: i32) -> (i32, i32) {
    %c0_i32 = arith.constant 0 : i32
    %c0_i32_0 = arith.constant 0 : i32
    return %arg0, %c0_i32 : i32, i32
  }
  func.func @transform_1(%arg0: i32) -> (i32, i32) {
    %c0_i32 = arith.constant 0 : i32
    %c0_i32_0 = arith.constant 0 : i32
    return %arg0, %c0_i32 : i32, i32
  }
  func.func @transform_2(%arg0: i32) -> (i32, i32) {
    %c0_i32 = arith.constant 0 : i32
    %c0_i32_0 = arith.constant 0 : i32
    %c0_i32_1 = arith.constant 0 : i32
    return %c0_i32, %c0_i32_0 : i32, i32
  }
  func.func @transform_3(%arg0: i32) -> (i32, i32) {
    %c0_i32 = arith.constant 0 : i32
    %c0_i32_0 = arith.constant 0 : i32
    return %arg0, %c0_i32 : i32, i32
  }
}

</mosaic_0001>

<bundles_post_ra>
// kernel: tpu_custom_call.1
= control target key start
LH: loop header
LB: loop body
LE: loop exit
PB: predicated region body
PF: predicated region fallthrough
CT: control target
= control target key end

     0   :  { %8 = vsyncpa [#allocation3], 0  ;;  %s1094_s0 = inlined_call_operand.vmem [shape: f32[64,128], index: 0, kind: input, shape index: {}]   ;;  %s1095_s1 = inlined_call_operand.vmem [shape: f32[64,8], index: 1, kind: input, shape index: {}]   ;;  %s1096_s2 = inlined_call_operand.vmem [shape: f32[8,128], index: 2, kind: input, shape index: {}]   ;;  %s1097_s3 = inlined_call_operand.hbm [shape: f32[64,128], index: 3, kind: output, shape index: {}]  }
   0x1   :  { %10 = vsyncpa [#allocation3 + $0x1], 0  ;;  %s976_s12 = smov 0   ;;  %s978_s13 = smov 0  }
   0x2   :  { %s980_s14 = smov 0   ;;  %s982_s15 = smov 0  }
   0x3 LB: > { %s997_s16 = sadd.s32 4294967295, %s951_s15   ;;  %s787_s17 = sadd.s32 4294967294, %s951_s15   ;;  %s951_s15 = sphi %s982_s15, %s1103_s15   ;;  %s947_s14 = sphi %s980_s14, %s1102_s14   ;;  %s943_s13 = sphi %s978_s13, %s1101_s13   ;;  %s939_s12 = sphi %s976_s12, %s1100_s12  }
   0x4   : > { %s1001_s18 = sadd.s32 1, %s951_s15   ;;  %s96_s19 = sadd.s32 1, %s947_s14 }
   0x5   : > { %s93_s20 = ssub.s32 %s951_s15, %s1001_s18  ;;  %p106_p0 = scmp.ne.s32.totalorder %s947_s14, %s943_s13 }
   0x6   : > { %p94_p1 = scmp.eq.s32.totalorder %s93_s20, 0  ;;  %p107_p2 = scmp.eq.s32.totalorder %s997_s16, 3 }
   0x7   : > { %p112_p3 = scmp.ne.s32.totalorder %s943_s13, %s939_s12  ;;  %p113_p4 = scmp.eq.s32.totalorder %s787_s17, 3 }
   0x8   : > { %s1012_s21 = scalar_select %p94_p1, %s947_s14, %s96_s19  }
   0x9   : > { %p1014_p5 = por %p107_p2, %p106_p0  ;;  %p1018_p6 = por %p113_p4, %p112_p3 }
   0xa   : > { %p790_p7 = scmp.ge.s32.totalorder %s951_s15, 1  ;;  %p152_p8 = scmp.lt.s32.totalorder %s951_s15, 5 }
   0xc   : > { %p153_p9 = pnand %p790_p7, %p152_p8 }
   0xd   : > { %s792_s26 = sshll.u32 (!%p153_p9), %s997_s16, 1  ;;  %s178_s4 = sand.u32 (!%p153_p9), 1, %s943_s13  }
   0xe   : > { %156 = sbr.rel (%p153_p9) target bundleno = 258 (0x102), region = 32  ;;  %p182_p10 = scmp.lt.s32.totalorder (!%p153_p9), %s792_s26, 7 }
   0xf   : > { %s791_s5 = sshll.u32 (!%p153_p9), %s178_s4, 4  ;;  %s801_s11 = sshll.u32 (!%p153_p9), %s997_s16, 8 }
  0x10   : > { %s180_s9 = scalar_lea.vmem (!%p153_p9), [#allocation2], %s791_s5  ;;  %s1050_s20 = scalar_lea.hbm (!%p153_p9), %s1097_s3, %s801_s11 }
  0x11   : > { %s713_s10 = sshll.u32 (!%p153_p9), %s180_s9, 4  ;;  %s1054_s24 = scalar_lea.sflag (!%p153_p9), [#allocation3], %s178_s4  ;;  %s1045_s10 = int_to_ptr.vmem [resolvable:$true] %s713_s10 }
  0x12   : > { %s891_s16 = scalar_lea.vmem (!%p153_p9), %s1045_s10, 256  ;;  %s953_s25 = smov (!%p153_p9), [#allocation2]  }
  0x13   : > { %v196_v0 = vld [vmem:[%s1096_s2] sm:$0xff]  ;;  %s1105_s26 = smov (!%p182_p10, %s792_s26), 7  ;;  %vm197_vm0 = vcmask 64512   ;;  %p892_p11 = scmp.ne.s32.totalorder %s1045_s10, %s891_s16 }
  0x14   : > { %v235_v1 = vand.u32 4294901760, %v196_v0  ;;  %s793_s27 = sshll.u32 %s1105_s26, 3  ;;  %s895_s26 = sshll.u32 %s953_s25, 4  ;;  %s896_s26 = int_to_ptr.vmem [resolvable:$false] %s895_s26 }
  0x15   : > { %s191_s30 = scalar_lea.vmem %s1095_s1, %s793_s27  ;;  %s185_s8 = scalar_lea.vmem %s1094_s0, %s793_s27 }
  0x16   : > { %820 = vmatprep.subr.mxu0 %v235_v1  ;;  %v322_v2 = vsub.f32 %v196_v0, %v235_v1  ;;  %v194_v5 = vld [vmem:[%s191_s30] sm:$0xff]  ;;  %v195_v6 = vld [vmem:[%s191_s30 + $0x8] sm:$0xff]  ;;  %p893_p12 = pnand %p892_p11, %p1014_p5  ;;  %s897_s27 = scalar_lea.vmem %s896_s26, 512 }
  0x17   : > { %821 = vmatpush3.msra.mxu0 %v235_v1  ;;  %v199_v7 = vsel %vm197_vm0, %v194_v5, 0  ;;  %v202_v8 = vsel %vm197_vm0, %v195_v6, 0  ;;  %v694_v37 = vld [vmem:[%s185_s8 + $0x8] sm:$0xff]  ;;  %v693_v42 = vld [vmem:[%s185_s8] sm:$0xff]  ;;  %p898_p0 = scmp.lt.s32.totalorder %s1045_s10, %s896_s26  ;;  %p899_p1 = scmp.lt.s32.totalorder %s897_s27, %s891_s16 }
  0x18   : > { %v323_v3 = vand.u32 4294901760, %v322_v2  ;;  %830 = vmatprep.subr.mxu0 %v322_v2  ;;  %v270_v10 = vand.u32 4294901760, %v199_v7  ;;  %v280_v11 = vand.u32 4294901760, %v202_v8  ;;  %p894_p13 = pneg %p893_p12 }
  0x19   : > { %p900_p2 = por %p899_p1, %p898_p0 }
  0x1a   : > { %v324_v4 = vsub.f32 %v322_v2, %v323_v3  ;;  %v271_v12 = vsub.f32 %v199_v7, %v270_v10  ;;  %827 = vmatprep.mubr.f32.mxu1 %v270_v10  ;;  %v281_v13 = vsub.f32 %v202_v8, %v280_v11 }
  0x1b   : > { %p901_p3 = pnand %p900_p2, %p894_p13 }
  0x1c   : > { %v325_v9 = vand.u32 4294901760, %v324_v4  ;;  %v272_v14 = vand.u32 4294901760, %v271_v12  ;;  %v282_v15 = vand.u32 4294901760, %v281_v13 }
  0x1e   : > { %825 = vmatprep.subr.mxu1 %v325_v9  ;;  %v273_v16 = vsub.f32 %v271_v12, %v272_v14  ;;  %v283_v17 = vsub.f32 %v281_v13, %v282_v15 }
  0x1f   : > { %826 = vmatpush3.msra.mxu1 %v325_v9 }
  0x20   : > { %828 = vmatmul.mubr.f32.vlgmr.msra.gmra.mxu1 %v280_v11  ;;  %835 = vmatprep.subr.mxu1 %v235_v1  ;;  %v274_v18 = vand.u32 4294901760, %v273_v16  ;;  %v284_v19 = vand.u32 4294901760, %v283_v17 }
  0x21   : > { %836 = vmatpush3.msra.mxu1 %v235_v1  ;;  %837 = vmatprep.mubr.f32.mxu1 %v272_v14 }
  0x22   : > { %845 = vmatprep.subr.mxu1 %v235_v1  ;;  %822 = vmatprep.mubr.f32.mxu0 %v274_v18 }
  0x23   : > { %823 = vmatmul.mubr.f32.vlgmr.msra.gmra.mxu0 %v284_v19 }
  0x24   : > { %838 = vmatmul.mubr.f32.vlgmr.msra.gmra.mxu1 %v282_v15  ;;  %831 = vmatpush3.msra.mxu0 %v322_v2 }
  0x25   : > { %846 = vmatpush3.msra.mxu1 %v235_v1  ;;  %847 = vmatprep.mubr.f32.mxu1 %v270_v10 }
  0x26   : > { %832 = vmatprep.mubr.f32.mxu0 %v271_v12  ;;  %840 = vmatprep.subr.mxu0 %v323_v3 }
  0x27   : > { %833 = vmatmul.mubr.f32.vlgmr.msra.gmra.mxu0 %v281_v13 }
  0x28   : > { %848 = vmatmul.mubr.f32.vlgmr.msra.gmra.mxu1 %v280_v11  ;;  %841 = vmatpush3.msra.mxu0 %v323_v3 }
  0x29   : > { %842 = vmatprep.mubr.f32.mxu0 %v270_v10 }
  0x2b   : > { %843 = vmatmul.mubr.f32.vlgmr.msra.gmra.mxu0 %v280_v11 }
  0xe0   : > { %v829_v20 = vpop.f32.mrf.mxu1 }
  0xe2   : > { %v362_v21 = vpop.f32.mrf.mxu1 }
  0xe3   : > { %v824_v22 = vpop.f32.mrf.mxu0 }
  0xe4   : > { %v839_v23 = vpop.f32.mrf.mxu1  ;;  %v369_v25 = vadd.f32 %v829_v20, %v824_v22 }
  0xe5   : > { %v276_v24 = vpop.f32.mrf.mxu0 }
  0xe6   : > { %v523_v27 = vpop.f32.mrf.mxu1  ;;  %v363_v28 = vadd.f32 %v362_v21, %v276_v24 }
  0xe7   : > { %v834_v26 = vpop.f32.mrf.mxu0 }
  0xe8   : > { %v450_v29 = vadd.f32 %v834_v26, %v369_v25  ;;  %v849_v34 = vpop.f32.mrf.mxu1 }
  0xe9   : > { %v442_v30 = vpop.f32.mrf.mxu0 }
  0xea   : > { %v532_v31 = vadd.f32 %v839_v23, %v450_v29  ;;  %v443_v32 = vadd.f32 %v442_v30, %v363_v28  ;;  %v683_v41 = vpop.f32.mrf.mxu1 }
  0xeb   : > { %v844_v33 = vpop.f32.mrf.mxu0 }
  0xec   : > { %v524_v35 = vadd.f32 %v523_v27, %v443_v32  ;;  %v612_v36 = vadd.f32 %v844_v33, %v532_v31 }
  0xed   : > { %v605_v38 = vpop.f32.mrf.mxu0 }
  0xee   : > { %v690_v39 = vadd.f32 %v849_v34, %v612_v36  ;;  %v606_v40 = vadd.f32 %v605_v38, %v524_v35 }
  0xf0   : > { %v696_v43 = vmul.f32 %v694_v37, %v690_v39  ;;  %v684_v44 = vadd.f32 %v683_v41, %v606_v40 }
  0xf2   : > { %698 = vst [vmem:[%s180_s9 + $0x8] sm:$0xff] %v696_v43  ;;  %v695_v45 = vmul.f32 %v693_v42, %v684_v44 }
  0xf4   : > { %697 = vst [vmem:[%s180_s9] sm:$0xff] %v695_v45 }
  0xf5   : > { %904 = shalt.err (!%p901_p3)
}
  0xf6   : > { %s905_s28 = scalar_lea.hbm %s1050_s20, 256  ;;  %s909_s4 = scalar_lea.hbm %s1097_s3, 1024 }
  0xf7   : > { %p906_p4 = scmp.ne.s32.totalorder %s1050_s20, %s905_s28  ;;  %p910_p9 = scmp.lt.s32.totalorder %s1050_s20, %s1097_s3 }
  0xf8   : > { %p911_p10 = scmp.lt.s32.totalorder %s909_s4, %s905_s28 }
  0xf9   : > { %p907_p7 = pnand %p906_p4, %p1014_p5 }
  0xfa   : > { %p912_p11 = por %p911_p10, %p910_p9 }
  0xfb   : > { %p908_p8 = pneg %p907_p7 }
  0xfd   : > { %p913_p12 = pnand %p912_p11, %p908_p8 }
  0xff   : > { %916 = shalt.err (!%p913_p12)
}
 0x100   : > { %s954_s7 = smov 128   ;;  %s955_s8 = smov 8  }
 0x101   : > { %850 = dma.vmem_to_hbm [thread:$0]  (%p1014_p5), %s1045_s10, 256, %s1050_s20, %s1054_s24, %s954_s7, %s954_s7, %s955_s8  }
 0x102 PF: > { %p856_p13 = scmp.ge.s32.totalorder %s951_s15, 2  ;;  %s728_s9 = sand.u32 1, %s939_s12  }
 0x103   : > { %s729_s11 = scalar_lea.sflag [#allocation3], %s728_s9 }
 0x104   : > { %p853_p0 = pnand %p856_p13, %p1018_p6 }
 0x106   : > { %p854_p1 = pneg %p853_p0 }
 0x108   : > { %934 = dma.done.wait (%p854_p1), %s729_s11, 256  }
 0x109   : > { %936 = vsyncadd (%p854_p1), %s729_s11, 4294967040  ;;  %p13_p2 = scmp.ge.s32.totalorder %s1001_s18, 6   ;;  %s1100_s12 = smov %s943_s13 }
 0x10a   : > { %s1101_s13 = smov %s947_s14  ;;  %s1102_s14 = smov %s1012_s21 }
 0x10b   : > { %s1103_s15 = smov %s1001_s18  ;;  %15 = sbr.rel (!%p13_p2) target bundleno = 3 (0x3), region = 70 }
 0x110   :  { %734 = vsyncpa [#allocation3], 1 }
 0x111   :  { %736 = vsyncpa [#allocation3 + $0x1], 1 }

</bundles_post_ra>
